<compile_context>
chip_gen: v5e
topology: v5e:2x2
jax: 0.10.0
libtpu: 0.0.40
codegen_flags: <defaults>
</compile_context>

<pallas_src>
import jax
import jax.numpy as jnp
from jax.experimental import pallas as pl
from jax.experimental.pallas import tpu as pltpu

TRIM_H = 28
TRIM_W = 28


def _trim_kernel(x_ref, o_ref):
    # x_ref: (Cb, Hb, Wb) stack of planes; o_ref: (Cb, 28, 28).
    o_ref[...] = x_ref[:, :TRIM_H, :TRIM_W]


def _round_up(v, m):
    return ((v + m - 1) // m) * m


def trim(x, *, vmem_budget_bytes=24 * 1024 * 1024):
    """Equivalent of PyTorch Trim.forward: x[:, :, :28, :28] (NCHW)."""
    N, C, H, W = x.shape
    assert H >= TRIM_H and W >= TRIM_W, "input spatial dims must be >= 28"

    NC = N * C
    x2 = x.reshape(NC, H, W)  # contiguous reshape; free.

    # Smallest legal input window covering the 28x28 trim region:
    #   sublane dim: 32 (= round_up(28, 8)) if H >= 32, else the full H.
    #   lane dim:    128 if W >= 128, else the full W.
    Hb = 32 if H >= 32 else H
    Wb = 128 if W >= 128 else W

    # Size Cb from a conservative double-buffered VMEM budget using the
    # *padded* per-plane footprints (lane -> 128, sublane -> 8/16/32).
    itemsize = jnp.dtype(x.dtype).itemsize
    sub = 8 if itemsize >= 4 else (16 if itemsize == 2 else 32)
    in_plane_bytes = _round_up(Hb, sub) * _round_up(Wb, 128) * itemsize
    out_plane_bytes = _round_up(TRIM_H, sub) * _round_up(TRIM_W, 128) * itemsize
    per_plane_bytes = 2 * (in_plane_bytes + out_plane_bytes)  # double-buffered
    cb_max = max(1, vmem_budget_bytes // per_plane_bytes)

    cb = min(cb_max, NC)
    if NC >= 2:
        # Keep at least 2 grid steps so both v7x TensorCores get work
        # (costs only one extra cheap step on single-TC v5e/v6e).
        cb = min(cb, pl.cdiv(NC, 2))
    cb = max(cb, 1)

    grid = (pl.cdiv(NC, cb),)

    y2 = pl.pallas_call(
        _trim_kernel,
        out_shape=jax.ShapeDtypeStruct((NC, TRIM_H, TRIM_W), x.dtype),
        grid=grid,
        in_specs=[
            pl.BlockSpec((cb, Hb, Wb), lambda i: (i, 0, 0)),
        ],
        out_specs=pl.BlockSpec((cb, TRIM_H, TRIM_W), lambda i: (i, 0, 0)),
        compiler_params=pltpu.CompilerParams(
            dimension_semantics=("parallel",),
            vmem_limit_bytes=48 * 1024 * 1024,
        ),
    )(x2)

    return y2.reshape(N, C, TRIM_H, TRIM_W)


if __name__ == "__main__":
    # Trim has no parameters (__init__ ignores *args); nothing to initialize.
    key = jax.random.PRNGKey(0)
    # Small but >= 28 in spatial dims so the trim actually removes rows/cols.
    x = jax.random.normal(key, (2, 4, 32, 32), dtype=jnp.float32)

    y = trim(x)
    y = jax.block_until_ready(y)

    # Correctness check against plain-JAX slicing semantics.
    ref = x[:, :, :28, :28]
    assert y.shape == (2, 4, 28, 28), y.shape
    assert y.dtype == x.dtype
    assert jnp.array_equal(y, ref), "mismatch vs reference slice"

    print("KERNEL_OK")
</pallas_src>

<mosaic_0001>
module attributes {stable_mosaic.version = 11 : i64} {
  func.func @_trim_kernel(%arg0: i32, %arg1: memref<4x32x32xf32, #tpu.memory_space<vmem>>, %arg2: memref<4x28x28xf32, #tpu.memory_space<vmem>>) attributes {dimension_semantics = [#tpu.dimension_semantics<parallel>], iteration_bounds = array<i64: 2>, scalar_prefetch = 0 : i64, scratch_operands = 0 : i64, tpu.core_type = #tpu.core_type<tc>, window_params = [{transform_indices = @transform_0, window_bounds = array<i64: 4, 32, 32>}, {transform_indices = @transform_1, window_bounds = array<i64: 4, 28, 28>}]} {
    %c0 = arith.constant 0 : index
    %c0_0 = arith.constant 0 : index
    %c0_1 = arith.constant 0 : index
    %0 = vector.load %arg1[%c0, %c0_0, %c0_1] : memref<4x32x32xf32, #tpu.memory_space<vmem>>, vector<4x28x28xf32>
    %c0_2 = arith.constant 0 : index
    %c0_3 = arith.constant 0 : index
    %c0_4 = arith.constant 0 : index
    %1 = vector.load %arg2[%c0_2, %c0_3, %c0_4] : memref<4x28x28xf32, #tpu.memory_space<vmem>>, vector<4x28x28xf32>
    tpu.vector_store %arg2[%c0_2, %c0_3, %c0_4], %0 {strides = array<i32>} : memref<4x28x28xf32, #tpu.memory_space<vmem>>, vector<4x28x28xf32>,
    return
  }
  func.func @transform_0(%arg0: i32) -> (i32, i32, i32) {
    %c0_i32 = arith.constant 0 : i32
    %c0_i32_0 = arith.constant 0 : i32
    %c0_i32_1 = arith.constant 0 : i32
    return %arg0, %c0_i32, %c0_i32_0 : i32, i32, i32
  }
  func.func @transform_1(%arg0: i32) -> (i32, i32, i32) {
    %c0_i32 = arith.constant 0 : i32
    %c0_i32_0 = arith.constant 0 : i32
    %c0_i32_1 = arith.constant 0 : i32
    return %arg0, %c0_i32, %c0_i32_0 : i32, i32, i32
  }
}

</mosaic_0001>

<bundles_post_ra>
// kernel: tpu_custom_call.1
= control target key start
LH: loop header
LB: loop body
LE: loop exit
PB: predicated region body
PF: predicated region fallthrough
CT: control target
= control target key end

     0   :  { %6 = vsyncpa [#allocation3], 0  ;;  %s527_s0 = inlined_call_operand.hbm [shape: f32[8,32,32], index: 0, kind: input, shape index: {}]   ;;  %s528_s1 = inlined_call_operand.vmem [shape: f32[8,28,28], index: 1, kind: output, shape index: {}]  }
   0x1   :  { %8 = vsyncpa [#allocation3 + $0x1], 0  ;;  %s384_s6 = smov 0   ;;  %s386_s7 = smov 0  }
   0x2   :  { %s388_s8 = smov 0   ;;  %s390_s9 = smov 0  }
   0x3 LB: > { %s247_s10 = sadd.s32 4294967295, %s370_s9   ;;  %s404_s11 = sadd.s32 1, %s370_s9   ;;  %s370_s9 = sphi %s390_s9, %s535_s9   ;;  %s366_s8 = sphi %s388_s8, %s534_s8   ;;  %s362_s7 = sphi %s386_s7, %s533_s7   ;;  %s358_s6 = sphi %s384_s6, %s532_s6  }
   0x4   : > { %s18_s12 = ssub.s32 %s370_s9, %s404_s11  ;;  %s21_s13 = sadd.s32 1, %s366_s8 }
   0x5   : > { %p19_p0 = scmp.eq.s32.totalorder %s18_s12, 0  ;;  %p28_p1 = scmp.ne.s32.totalorder %s366_s8, %s362_s7 }
   0x6   : > { %p29_p2 = scmp.eq.s32.totalorder %s370_s9, 0  ;;  %p34_p3 = scmp.ne.s32.totalorder %s362_s7, %s358_s6 }
   0x7   : > { %s414_s14 = scalar_select %p19_p0, %s366_s8, %s21_s13  }
   0x8   : > { %p416_p4 = por %p29_p2, %p28_p1  ;;  %p35_p5 = scmp.eq.s32.totalorder %s247_s10, 0 }
   0x9   : > { %p271_p6 = scmp.lt.s32.totalorder %s370_s9, 2  ;;  %s84_s17 = sand.u32 1, %s366_s8  }
   0xa   : > { %p423_p7 = por %p35_p5, %p34_p3  ;;  %s251_s18 = sshll.u32 %s84_s17, 7 }
   0xb   : > { %s263_s19 = sshll.u32 %s370_s9, 7  ;;  %s88_s23 = scalar_lea.vmem [#allocation2], %s251_s18 }
   0xc   : > { %s94_s22 = scalar_lea.hbm %s527_s0, %s263_s19  ;;  %s97_s24 = sshll.u32 %s88_s23, 4  ;;  %s98_s24 = int_to_ptr.vmem [resolvable:$true] %s97_s24 }
   0xd   : > { %s95_s25 = sshll.u32 %s94_s22, 4  ;;  %p434_p8 = pnand %p271_p6, %p416_p4  ;;  %s96_s25 = int_to_ptr.hbm [resolvable:$true] %s95_s25 }
   0xe   : > { %p255_p9 = scmp.ge.s32.totalorder %s370_s9, 1  ;;  %s85_s27 = scalar_lea.sflag [#allocation3], %s84_s17 }
   0xf   : > { %s306_s28 = sshra.s32 %s96_s25, 4  ;;  %p310_p11 = pneg %p434_p8  ;;  %s307_s28 = int_to_ptr.hbm [resolvable:$true] %s306_s28 }
  0x10   : > { %s308_s29 = scalar_lea.hbm %s307_s28, 128  ;;  %s313_s3 = scalar_lea.hbm %s527_s0, 256 }
  0x11   : > { %p309_p10 = scmp.ne.s32.totalorder %s307_s28, %s308_s29  ;;  %p314_p0 = scmp.lt.s32.totalorder %s307_s28, %s527_s0 }
  0x12   : > { %p315_p1 = scmp.lt.s32.totalorder %s313_s3, %s308_s29 }
  0x13   : > { %p311_p12 = pnand %p310_p11, %p309_p10 }
  0x14   : > { %p316_p2 = por %p315_p1, %p314_p0 }
  0x15   : > { %p312_p13 = pneg %p311_p12 }
  0x17   : > { %p317_p3 = pnand %p316_p2, %p312_p13 }
  0x19   : > { %320 = shalt.err (!%p317_p3)
}
  0x1a   : > { %s372_s6 = smov 128   ;;  %s373_s12 = smov 8  }
  0x1b   : > { %270 = dma.hbm_to_vmem [thread:$0]  (!%p434_p8), %s96_s25, 2048, %s98_s24, %s85_s27, %s372_s6, %s372_s6, %s373_s12  }
  0x1c   : > { %p105_p4 = scmp.lt.s32.totalorder %s370_s9, 3 }
  0x1e   : > { %p106_p5 = pnand %p255_p9, %p105_p4 }
  0x1f   : > { %s111_s13 = sand.u32 (!%p106_p5), 1, %s362_s7  }
  0x20   : > { %109 = sbr.rel (%p106_p5) target bundleno = 60 (0x3c), region = 24  ;;  %s256_s15 = sshll.u32 (!%p106_p5), %s111_s13, 7 }
  0x21   : > { %s112_s17 = scalar_lea.sflag (!%p106_p5), [#allocation3], %s111_s13  ;;  %s453_s18 = scalar_lea.vmem (!%p106_p5), [#allocation2], %s256_s15 }
  0x25   : > { %353 = dma.done.wait (%p423_p7), %s112_s17, 2048  }
  0x26   : > { %355 = vsyncadd (%p423_p7), %s112_s17, 4294965248  ;;  %s257_s19 = sshll.u32 %s247_s10, 2  ;;  %vm160_vm0 = vcmask 228352   ;;  %v144_v0 = vld [vmem:[%s453_s18] sm:$0xff]  ;;  %v145_v1 = vld [vmem:[%s453_s18 + $0x8] sm:$0xff]  ;;  %vm164_vm1 = vcmask 224256  }
  0x27   : > { %p138_p6 = scmp.lt.s32.totalorder %s257_s19, 7  ;;  %v146_v2 = vld [vmem:[%s453_s18 + $0x10] sm:$0xff]  ;;  %v147_v3 = vld [vmem:[%s453_s18 + $0x18] sm:$0xf]  ;;  %v148_v4 = vld [vmem:[%s453_s18 + $0x20] sm:$0xff] }
  0x28   : > { %v149_v5 = vld [vmem:[%s453_s18 + $0x28] sm:$0xff]  ;;  %v150_v6 = vld [vmem:[%s453_s18 + $0x30] sm:$0xff]  ;;  %v151_v7 = vld [vmem:[%s453_s18 + $0x38] sm:$0xf] }
  0x29   : > { %s537_s19 = smov (!%p138_p6, %s257_s19), 7  ;;  %v152_v8 = vld [vmem:[%s453_s18 + $0x40] sm:$0xff]  ;;  %v153_v9 = vld [vmem:[%s453_s18 + $0x48] sm:$0xff]  ;;  %v154_v10 = vld [vmem:[%s453_s18 + $0x50] sm:$0xff] }
  0x2a   : > { %s264_s20 = sshll.u32 %s537_s19, 5  ;;  %v155_v11 = vld [vmem:[%s453_s18 + $0x58] sm:$0xf]  ;;  %v156_v12 = vld [vmem:[%s453_s18 + $0x60] sm:$0xff]  ;;  %v157_v13 = vld [vmem:[%s453_s18 + $0x68] sm:$0xff] }
  0x2b   : > { %s464_s16 = scalar_lea.vmem %s528_s1, %s264_s20  ;;  %v158_v14 = vld [vmem:[%s453_s18 + $0x70] sm:$0xff]  ;;  %v159_v15 = vld [vmem:[%s453_s18 + $0x78] sm:$0xf] }
  0x2c   : > { %161 = vst.msk [vmem:[%s464_s16] sm:$0xff] %vm160_vm0, %v144_v0 }
  0x2d   : > { %162 = vst.msk [vmem:[%s464_s16 + $0x8] sm:$0xff] %vm160_vm0, %v145_v1 }
  0x2e   : > { %163 = vst.msk [vmem:[%s464_s16 + $0x10] sm:$0xff] %vm160_vm0, %v146_v2 }
  0x2f   : > { %165 = vst.msk [vmem:[%s464_s16 + $0x18] sm:$0xf] %vm164_vm1, %v147_v3 }
  0x30   : > { %166 = vst.msk [vmem:[%s464_s16 + $0x20] sm:$0xff] %vm160_vm0, %v148_v4 }
  0x31   : > { %167 = vst.msk [vmem:[%s464_s16 + $0x28] sm:$0xff] %vm160_vm0, %v149_v5 }
  0x32   : > { %168 = vst.msk [vmem:[%s464_s16 + $0x30] sm:$0xff] %vm160_vm0, %v150_v6 }
  0x33   : > { %169 = vst.msk [vmem:[%s464_s16 + $0x38] sm:$0xf] %vm164_vm1, %v151_v7 }
  0x34   : > { %170 = vst.msk [vmem:[%s464_s16 + $0x40] sm:$0xff] %vm160_vm0, %v152_v8 }
  0x35   : > { %171 = vst.msk [vmem:[%s464_s16 + $0x48] sm:$0xff] %vm160_vm0, %v153_v9 }
  0x36   : > { %172 = vst.msk [vmem:[%s464_s16 + $0x50] sm:$0xff] %vm160_vm0, %v154_v10 }
  0x37   : > { %173 = vst.msk [vmem:[%s464_s16 + $0x58] sm:$0xf] %vm164_vm1, %v155_v11 }
  0x38   : > { %174 = vst.msk [vmem:[%s464_s16 + $0x60] sm:$0xff] %vm160_vm0, %v156_v12 }
  0x39   : > { %175 = vst.msk [vmem:[%s464_s16 + $0x68] sm:$0xff] %vm160_vm0, %v157_v13 }
  0x3a   : > { %176 = vst.msk [vmem:[%s464_s16 + $0x70] sm:$0xff] %vm160_vm0, %v158_v14 }
  0x3b   : > { %177 = vst.msk [vmem:[%s464_s16 + $0x78] sm:$0xf] %vm164_vm1, %v159_v15 }
  0x3c PF: > { %p11_p7 = scmp.ge.s32.totalorder %s404_s11, 4   ;;  %s532_s6 = smov %s362_s7 }
  0x3d   : > { %s533_s7 = smov %s366_s8  ;;  %s534_s8 = smov %s414_s14 }
  0x3e   : > { %s535_s9 = smov %s404_s11  ;;  %13 = sbr.rel (!%p11_p7) target bundleno = 3 (0x3), region = 64 }
  0x43   :  { %202 = vsyncpa [#allocation3], 1 }
  0x44   :  { %204 = vsyncpa [#allocation3 + $0x1], 1 }

</bundles_post_ra>
